<compile_context>
chip_gen: v6e
topology: v6e:2x2x1
jax: 0.10.0
libtpu: 0.0.40
codegen_flags: <defaults>
</compile_context>

<pallas_src>
import jax
import jax.numpy as jnp
from jax.experimental import pallas as pl
from jax.experimental.pallas import tpu as pltpu

# ---- model constants -------------------------------------------------------
NUM_SECTION_TOKENS = 91
SECTION_VOCAB = 20
SECTION_EMB = 16
NUM_DENSITY_TOKENS = 2
DENSITY_VOCAB = 1
DENSITY_EMB = 8
HIDDEN = 64
NUM_ACTIONS = 3
FC_IN = NUM_SECTION_TOKENS * SECTION_EMB + NUM_DENSITY_TOKENS * DENSITY_EMB + 2  # 1474

PLAY_SCREEN_WIDTH = 800.0   # cfg.play_screen_width
SCREEN_HEIGHT = 600.0       # cfg.screen_height

# ---- padded (hardware-aligned) sizes ---------------------------------------
HIDDEN_PAD = 128                                 # 64 -> 128 lanes
OUT_PAD = 128                                    # 3  -> 128 lanes (slice [:3] in wrapper)
K_ROWS = NUM_SECTION_TOKENS * SECTION_VOCAB      # 1820 fused-table rows
K_PAD = 1920                                     # 15 * 128 (MXU-aligned contraction dim)


# ---- fused kernel ----------------------------------------------------------
def dqn_mlp_kernel(onehot_ref,                       # VMEM bf16 (1, 1920)
                   sec_fused_ref, base_ref,          # VMEM bf16 (1920,128), f32 (1,128)
                   w1_ref, b1_ref, w2_ref, b2_ref,   # VMEM bf16/f32
                   o_ref):                           # VMEM f32 (1, 128)
    # ----- layer 0: one-hot @ fused(embedding . w0) on the MXU ---------------
    # base already holds screen_dims@w0 + b0 + the (constant) density path.
    h = jnp.dot(onehot_ref[...], sec_fused_ref[...],
                preferred_element_type=jnp.float32) + base_ref[...]
    h = jnp.maximum(h, 0.0)

    # ----- layer 1: (1,128)@(128,128) on MXU, bf16 inputs / f32 accumulate ---
    h = jnp.dot(h.astype(jnp.bfloat16), w1_ref[...],
                preferred_element_type=jnp.float32) + b1_ref[...]
    h = jnp.maximum(h, 0.0)

    # ----- layer 2 (head, no relu): lane-dense (1,128) output store ----------
    o_ref[...] = jnp.dot(h.astype(jnp.bfloat16), w2_ref[...],
                         preferred_element_type=jnp.float32) + b2_ref[...]


_COST = pl.CostEstimate(
    flops=2 * (K_PAD * HIDDEN_PAD + HIDDEN_PAD * HIDDEN_PAD + HIDDEN_PAD * OUT_PAD),
    transcendentals=0,
    bytes_accessed=(K_PAD * 2                       # onehot bf16
                    + K_PAD * HIDDEN_PAD * 2        # sec_fused bf16
                    + HIDDEN_PAD * 4                # base f32
                    + HIDDEN_PAD * HIDDEN_PAD * 2   # w1 bf16
                    + HIDDEN_PAD * 4                # b1 f32
                    + HIDDEN_PAD * OUT_PAD * 2      # w2 bf16
                    + OUT_PAD * 4                   # b2 f32
                    + OUT_PAD * 4),                 # output f32
)


@jax.jit
def dqn_forward(section, densities, fused):
    # DENSITY_VOCAB == 1 -> density indices are always 0; their contribution
    # is folded into `base` offline, so `densities` is accepted but unused.
    del densities
    # Clamp (guards against corrupted indices) and build flat fused-table row
    # ids i*20 + section[i], then a lane-dense (1, K_PAD) bf16 one-hot.
    sec = jnp.clip(section.astype(jnp.int32), 0, SECTION_VOCAB - 1)
    rids = jnp.arange(NUM_SECTION_TOKENS, dtype=jnp.int32) * SECTION_VOCAB + sec
    cols = jnp.arange(K_PAD, dtype=jnp.int32)
    onehot = (cols[None, :] == rids[:, None]).any(axis=0)[None, :].astype(jnp.bfloat16)

    vmem = pl.BlockSpec(memory_space=pltpu.MemorySpace.VMEM)
    q = pl.pallas_call(
        dqn_mlp_kernel,
        out_shape=jax.ShapeDtypeStruct((1, OUT_PAD), jnp.float32),
        in_specs=[vmem] * 7,
        out_specs=vmem,
        cost_estimate=_COST,
    )(onehot,
      fused["sec_fused"], fused["base"],
      fused["w1"], fused["b1"], fused["w2"], fused["b2"])
    # PyTorch forward returns a flat (3,) vector; drop the lane padding.
    return q[0, :NUM_ACTIONS]


# ---- parameter init (mimics nn.Embedding / nn.Linear defaults) -------------
def init_params(key):
    ks = jax.random.split(key, 5)

    def linear(k, fan_in, fan_out):
        bound = 1.0 / (fan_in ** 0.5)
        kw, kb = jax.random.split(k)
        w = jax.random.uniform(kw, (fan_in, fan_out), jnp.float32, -bound, bound)
        b = jax.random.uniform(kb, (1, fan_out), jnp.float32, -bound, bound)
        return w, b

    sec_tbl = jax.random.normal(ks[0], (SECTION_VOCAB, SECTION_EMB), jnp.float32)
    den_tbl = jax.random.normal(ks[1], (DENSITY_VOCAB, DENSITY_EMB), jnp.float32)
    w0, b0 = linear(ks[2], FC_IN, HIDDEN)
    w1, b1 = linear(ks[3], HIDDEN, HIDDEN)
    w2, b2 = linear(ks[4], HIDDEN, NUM_ACTIONS)
    return dict(section_embedding=sec_tbl, density_embedding=den_tbl,
                w0=w0, b0=b0, w1=w1, b1=b1, w2=w2, b2=b2)


# ---- one-time preprocessing: fold w0 into the embedding tables & pad -------
def fuse_and_pad_params(params):
    hp = jax.lax.Precision.HIGHEST
    w0, b0 = params["w0"], params["b0"]                       # (1474,64), (1,64)
    sec_tbl = params["section_embedding"]                     # (20,16)
    den_tbl = params["density_embedding"]                     # (1,8)

    # sec_fused[i*20 + v, n] = sum_k sec_tbl[v,k] * w0[16*i + k, n]
    w0_sec = w0[: NUM_SECTION_TOKENS * SECTION_EMB].reshape(
        NUM_SECTION_TOKENS, SECTION_EMB, HIDDEN)
    sec_fused = jnp.einsum("vk,ikh->ivh", sec_tbl, w0_sec, precision=hp)
    sec_fused = sec_fused.reshape(K_ROWS, HIDDEN)             # (1820, 64)

    den_start = NUM_SECTION_TOKENS * SECTION_EMB              # 1456
    w0_den = w0[den_start: den_start + NUM_DENSITY_TOKENS * DENSITY_EMB].reshape(
        NUM_DENSITY_TOKENS, DENSITY_EMB, HIDDEN)
    den_fused = jnp.einsum("vk,jkh->jvh", den_tbl, w0_den, precision=hp)
    den_fused = den_fused.reshape(NUM_DENSITY_TOKENS * DENSITY_VOCAB, HIDDEN)  # (2,64)

    # screen_dims @ w0[1472:1474] + b0  (exact f32 elementwise; the reference
    # module's float16 detour is lossless for 800/600 and dropped here), plus
    # the constant density-embedding contribution (vocab 1 -> index always 0).
    scr_start = den_start + NUM_DENSITY_TOKENS * DENSITY_EMB  # 1472
    screen = jnp.array([PLAY_SCREEN_WIDTH, SCREEN_HEIGHT], jnp.float32)
    base = (screen[:, None] * w0[scr_start: scr_start + 2]).sum(axis=0) + b0[0]
    base = base + den_fused[0] + den_fused[1]

    pad_h = HIDDEN_PAD - HIDDEN

    def pad_last(a):      # zero-pad last dim 64 -> 128
        return jnp.pad(a, [(0, 0)] * (a.ndim - 1) + [(0, pad_h)])

    sec_fused_p = jnp.zeros((K_PAD, HIDDEN_PAD), jnp.float32)
    sec_fused_p = sec_fused_p.at[:K_ROWS, :HIDDEN].set(sec_fused)

    w1p = jnp.zeros((HIDDEN_PAD, HIDDEN_PAD), jnp.float32).at[:HIDDEN, :HIDDEN].set(params["w1"])
    w2p = jnp.zeros((HIDDEN_PAD, OUT_PAD), jnp.float32).at[:HIDDEN, :NUM_ACTIONS].set(params["w2"])
    b1p = pad_last(params["b1"])                                          # (1,128)
    b2p = jnp.pad(params["b2"], ((0, 0), (0, OUT_PAD - NUM_ACTIONS)))     # (1,128)

    return dict(
        sec_fused=sec_fused_p.astype(jnp.bfloat16),   # (1920, 128) bf16 (MXU one-hot path)
        base=pad_last(base[None, :]),                 # (1,    128) f32
        w1=w1p.astype(jnp.bfloat16),                  # (128,  128) bf16 (MXU input)
        b1=b1p,                                       # (1,    128) f32
        w2=w2p.astype(jnp.bfloat16),                  # (128,  128) bf16 (MXU input)
        b2=b2p,                                       # (1,    128) f32
    )


# ---- plain-JAX reference (original formulation) for a sanity check ---------
def reference_forward(section, densities, params):
    hp = jax.lax.Precision.HIGHEST
    sec_emb = jnp.take(params["section_embedding"], section, axis=0)
    den_emb = jnp.take(params["density_embedding"], densities, axis=0)
    screen = jnp.array([PLAY_SCREEN_WIDTH, SCREEN_HEIGHT], jnp.float32)
    x = jnp.concatenate([sec_emb.reshape(-1), den_emb.reshape(-1), screen], axis=0)
    h = jnp.maximum(jnp.dot(x, params["w0"], precision=hp) + params["b0"][0], 0.0)
    # mirror the kernel's bf16 weight storage / bf16 MXU inputs for layers 1-2
    w1 = params["w1"].astype(jnp.bfloat16)
    w2 = params["w2"].astype(jnp.bfloat16)
    h = jnp.maximum(jnp.dot(h.astype(jnp.bfloat16), w1,
                            preferred_element_type=jnp.float32) + params["b1"][0], 0.0)
    return jnp.dot(h.astype(jnp.bfloat16), w2,
                   preferred_element_type=jnp.float32) + params["b2"][0]


if __name__ == "__main__":
    key = jax.random.PRNGKey(0)
    pkey, skey = jax.random.split(key)
    params = init_params(pkey)
    fused = jax.tree_util.tree_map(jax.block_until_ready, fuse_and_pad_params(params))

    # 91 section tokens * 16 + 2 density tokens * 8 + 2 screen dims = 1474
    section = jax.random.randint(skey, (NUM_SECTION_TOKENS,), 0, SECTION_VOCAB,
                                 dtype=jnp.int32)
    densities = jnp.zeros((NUM_DENSITY_TOKENS,), dtype=jnp.int32)  # vocab size 1

    q_values = dqn_forward(section, densities, fused)
    jax.block_until_ready(q_values)
    assert q_values.shape == (NUM_ACTIONS,)

    q_ref = reference_forward(section, densities, params)
    assert jnp.allclose(q_values, q_ref, rtol=5e-2, atol=5e-2), (q_values, q_ref)

    print("KERNEL_OK")
</pallas_src>

<mosaic_0001>
module attributes {stable_mosaic.version = 11 : i64} {
  func.func @dqn_mlp_kernel(%arg0: memref<1x1920xbf16, #tpu.memory_space<vmem>>, %arg1: memref<1920x128xbf16, #tpu.memory_space<vmem>>, %arg2: memref<1x128xf32, #tpu.memory_space<vmem>>, %arg3: memref<128x128xbf16, #tpu.memory_space<vmem>>, %arg4: memref<1x128xf32, #tpu.memory_space<vmem>>, %arg5: memref<128x128xbf16, #tpu.memory_space<vmem>>, %arg6: memref<1x128xf32, #tpu.memory_space<vmem>>, %arg7: memref<1x128xf32, #tpu.memory_space<vmem>>) attributes {dimension_semantics = [], scalar_prefetch = 0 : i64, scratch_operands = 0 : i64, tpu.core_type = #tpu.core_type<tc>} {
    %c0 = arith.constant 0 : index
    %c0_0 = arith.constant 0 : index
    %0 = vector.load %arg0[%c0, %c0_0] : memref<1x1920xbf16, #tpu.memory_space<vmem>>, vector<1x1920xbf16>
    %c0_1 = arith.constant 0 : index
    %c0_2 = arith.constant 0 : index
    %1 = vector.load %arg1[%c0_1, %c0_2] : memref<1920x128xbf16, #tpu.memory_space<vmem>>, vector<1920x128xbf16>
    %cst = arith.constant dense<0.000000e+00> : vector<1x128xf32>
    %2 = tpu.matmul %0, %1, %cst {dimension_numbers = #tpu.dot_dimension_numbers<[1], [0], [0], [1], [0, 0, 1, 1], [], []>} : vector<1x1920xbf16>, vector<1920x128xbf16>, vector<1x128xf32> -> vector<1x128xf32>
    %c0_3 = arith.constant 0 : index
    %c0_4 = arith.constant 0 : index
    %3 = vector.load %arg2[%c0_3, %c0_4] : memref<1x128xf32, #tpu.memory_space<vmem>>, vector<1x128xf32>
    %4 = arith.addf %2, %3 : vector<1x128xf32>
    %cst_5 = arith.constant 0.000000e+00 : f32
    %5 = vector.broadcast %cst_5 : f32 to vector<1x128xf32>
    %6 = arith.maximumf %4, %5 : vector<1x128xf32>
    %7 = arith.truncf %6 : vector<1x128xf32> to vector<1x128xbf16>
    %c0_6 = arith.constant 0 : index
    %c0_7 = arith.constant 0 : index
    %8 = vector.load %arg3[%c0_6, %c0_7] : memref<128x128xbf16, #tpu.memory_space<vmem>>, vector<128x128xbf16>
    %cst_8 = arith.constant dense<0.000000e+00> : vector<1x128xf32>
    %9 = tpu.matmul %7, %8, %cst_8 {dimension_numbers = #tpu.dot_dimension_numbers<[1], [0], [0], [1], [0, 0, 1, 1], [], []>} : vector<1x128xbf16>, vector<128x128xbf16>, vector<1x128xf32> -> vector<1x128xf32>
    %c0_9 = arith.constant 0 : index
    %c0_10 = arith.constant 0 : index
    %10 = vector.load %arg4[%c0_9, %c0_10] : memref<1x128xf32, #tpu.memory_space<vmem>>, vector<1x128xf32>
    %11 = arith.addf %9, %10 : vector<1x128xf32>
    %cst_11 = arith.constant 0.000000e+00 : f32
    %12 = vector.broadcast %cst_11 : f32 to vector<1x128xf32>
    %13 = arith.maximumf %11, %12 : vector<1x128xf32>
    %14 = arith.truncf %13 : vector<1x128xf32> to vector<1x128xbf16>
    %c0_12 = arith.constant 0 : index
    %c0_13 = arith.constant 0 : index
    %15 = vector.load %arg5[%c0_12, %c0_13] : memref<128x128xbf16, #tpu.memory_space<vmem>>, vector<128x128xbf16>
    %cst_14 = arith.constant dense<0.000000e+00> : vector<1x128xf32>
    %16 = tpu.matmul %14, %15, %cst_14 {dimension_numbers = #tpu.dot_dimension_numbers<[1], [0], [0], [1], [0, 0, 1, 1], [], []>} : vector<1x128xbf16>, vector<128x128xbf16>, vector<1x128xf32> -> vector<1x128xf32>
    %c0_15 = arith.constant 0 : index
    %c0_16 = arith.constant 0 : index
    %17 = vector.load %arg6[%c0_15, %c0_16] : memref<1x128xf32, #tpu.memory_space<vmem>>, vector<1x128xf32>
    %18 = arith.addf %16, %17 : vector<1x128xf32>
    %c0_17 = arith.constant 0 : index
    %c0_18 = arith.constant 0 : index
    %19 = vector.load %arg7[%c0_17, %c0_18] : memref<1x128xf32, #tpu.memory_space<vmem>>, vector<1x128xf32>
    tpu.vector_store %arg7[%c0_17, %c0_18], %18 {strides = array<i32>} : memref<1x128xf32, #tpu.memory_space<vmem>>, vector<1x128xf32>,
    return
  }
}

</mosaic_0001>

<bundles_post_ra>
// kernel: dqn_forward.1
= control target key start
LH: loop header
LB: loop body
LE: loop exit
PB: predicated region body
PF: predicated region fallthrough
CT: control target
= control target key end

     0   :  { %12 = vsyncpa [#allocation3], 0  ;;  %s2402_s0 = inlined_call_operand.vmem [shape: bf16[1,1920], index: 0, kind: input, shape index: {}]   ;;  %s2403_s1 = inlined_call_operand.hbm [shape: bf16[1920,128], index: 1, kind: input, shape index: {}]   ;;  %s2404_s2 = inlined_call_operand.vmem [shape: f32[1,128], index: 2, kind: input, shape index: {}]   ;;  %s2405_s3 = inlined_call_operand.hbm [shape: bf16[128,128], index: 3, kind: input, shape index: {}]   ;;  %s2406_s4 = inlined_call_operand.vmem [shape: f32[1,128], index: 4, kind: input, shape index: {}]   ;;  %s2407_s5 = inlined_call_operand.hbm [shape: bf16[128,128], index: 5, kind: input, shape index: {}]   ;;  %s2408_s6 = inlined_call_operand.vmem [shape: f32[1,128], index: 6, kind: input, shape index: {}]   ;;  %s2409_s7 = inlined_call_operand.vmem [shape: f32[1,128], index: 7, kind: output, shape index: {}]  }
   0x1   :  { %13 = vsyncpa [#allocation5], 0  ;;  %s2273_s24 = smov [#allocation4]   ;;  %s2274_s26 = smov [#allocation2]  }
   0x2   :  { %s35_s25 = sshll.u32 %s2273_s24, 4  ;;  %s21_s27 = sshll.u32 %s2274_s26, 4  ;;  %s36_s25 = int_to_ptr.vmem [resolvable:$true] %s35_s25  ;;  %s22_s27 = int_to_ptr.vmem [resolvable:$true] %s21_s27 }
   0x3   :  { %s2217_s28 = scalar_lea.vmem %s36_s25, 1024  ;;  %p2222_p1 = scmp.lt.s32.totalorder %s36_s25, %s36_s25 }
   0x4   :  { %p2218_p0 = scmp.ne.s32.totalorder %s36_s25, %s2217_s28  ;;  %p2223_p2 = scmp.lt.s32.totalorder %s2217_s28, %s2217_s28 }
   0x6   :  { %p2224_p3 = por %p2223_p2, %p2222_p1 }
   0x8   :  { %p2225_p4 = pnand %p2224_p3, %p2218_p0 }
   0xa   :  { %2228 = shalt.err (!%p2225_p4)
}
   0xb   :  { %s2275_s29 = smov 64   ;;  %s2276_s30 = smov 4  }
   0xc   :  { %41 = dma.hbm_to_vmem [thread:$0]  %s2405_s3, 1024, %s36_s25, [#allocation5], %s2275_s29, %s2275_s29, %s2276_s30  }
   0xd   :  { %s2237_s10 = scalar_lea.vmem %s22_s27, 15360  ;;  %p2242_p6 = scmp.lt.s32.totalorder %s22_s27, %s22_s27 }
   0xe   :  { %p2238_p5 = scmp.ne.s32.totalorder %s22_s27, %s2237_s10  ;;  %p2243_p7 = scmp.lt.s32.totalorder %s2237_s10, %s2237_s10 }
  0x10   :  { %p2244_p8 = por %p2243_p7, %p2242_p6 }
  0x12   :  { %p2245_p9 = pnand %p2244_p8, %p2238_p5 }
  0x14   :  { %2248 = shalt.err (!%p2245_p9)
}
  0x15   :  { %27 = dma.hbm_to_vmem [thread:$0]  %s2403_s1, 15360, %s22_s27, [#allocation3], %s2275_s29, %s2275_s29, %s2276_s30  }
  0x16   :  { %s2277_s13 = smov [#allocation6]  }
  0x17   :  { %s49_s14 = sshll.u32 %s2277_s13, 4  ;;  %s50_s14 = int_to_ptr.vmem [resolvable:$true] %s49_s14 }
  0x18   :  { %s2257_s15 = scalar_lea.vmem %s50_s14, 1024  ;;  %p2262_p11 = scmp.lt.s32.totalorder %s50_s14, %s50_s14 }
  0x19   :  { %p2258_p10 = scmp.ne.s32.totalorder %s50_s14, %s2257_s15  ;;  %p2263_p12 = scmp.lt.s32.totalorder %s2257_s15, %s2257_s15 }
  0x1b   :  { %p2264_p13 = por %p2263_p12, %p2262_p11 }
  0x1d   :  { %p2265_p0 = pnand %p2264_p13, %p2258_p10 }
  0x1f   :  { %2268 = shalt.err (!%p2265_p0)
}
  0x20   :  { %55 = dma.hbm_to_vmem [thread:$0]  %s2407_s5, 1024, %s50_s14, [#allocation5], %s2275_s29, %s2275_s29, %s2276_s30  }
  0x21   :  { %2269 = dma.done.wait [#allocation3], 15360  }
  0x22   :  { %2270 = vsyncadd [#allocation3], 4294951936 }
  0x23   :  { %2271 = dma.done.wait [#allocation5], 2048  }
  0x24   :  { %2272 = vsyncadd [#allocation5], 4294965248  ;;  %v2071_v0 = vld [vmem:[#allocation2 + $0x78] sm:$0xff]   ;;  %v2075_v4 = vld [vmem:[#allocation2 + $0x70] sm:$0xff]   ;;  %v2278_v22 = vmov 1966171168   ;;  %v317_v24 = vlaneseq }
  0x25   :  { %v2072_v1 = vld [vmem:[#allocation2 + $0xf8] sm:$0xff]   ;;  %1822 = vmatprep.subr.bf16.mxu0 %v2071_v0  ;;  %v2076_v5 = vld [vmem:[#allocation2 + $0xf0] sm:$0xff]   ;;  %v2079_v8 = vld [vmem:[#allocation2 + $0x68] sm:$0xff]   ;;  %v315_v23 = vunpack.c.l.s4 %v2278_v22  ;;  %vm2280_vm0 = vmmov 0  }
  0x26   :  { %v2073_v2 = vld [vmem:[#allocation2 + $0x38] sm:$0xff]   ;;  %1844 = vmatprep.subr.bf16.mxu1 %v2072_v1  ;;  %v2077_v6 = vld [vmem:[#allocation2 + $0x30] sm:$0xff]   ;;  %v2080_v9 = vld [vmem:[#allocation2 + $0xe8] sm:$0xff]   ;;  %v318_v30 = vshrl.u32 %v317_v24, 7 }
  0x27   :  { %v2074_v3 = vld [vmem:[#allocation2 + $0xb8] sm:$0xff]   ;;  %1823 = vmatpush3.bf16.msra.mxu0 %v2073_v2  ;;  %v2078_v7 = vld [vmem:[#allocation2 + $0xb0] sm:$0xff]   ;;  %v2081_v10 = vld [vmem:[#allocation2 + $0x28] sm:$0xff]   ;;  %v316_v29 = vunpack.c.0.s8 %v315_v23 }
  0x28   :  { %1845 = vmatpush3.bf16.msra.mxu1 %v2074_v3  ;;  %1824 = vmatprep.subr.bf16.mxu0 %v2075_v4  ;;  %v2082_v11 = vld [vmem:[#allocation2 + $0xa8] sm:$0xff]   ;;  %v2083_v12 = vld [vmem:[#allocation2 + $0x60] sm:$0xff]   ;;  %v2087_v16 = vld [vmem:[#allocation2 + $0x58] sm:$0xff]  }
  0x29   :  { %1846 = vmatprep.subr.bf16.mxu1 %v2076_v5  ;;  %v2084_v13 = vld [vmem:[#allocation2 + $0xe0] sm:$0xff]   ;;  %v2088_v17 = vld [vmem:[#allocation2 + $0xd8] sm:$0xff]   ;;  %v2091_v20 = vld [vmem:[#allocation2 + $0x50] sm:$0xff]   ;;  %v2330_v35 = vsub.s32 %v316_v29, %v318_v30 }
  0x2a   :  { %v2085_v14 = vld [vmem:[#allocation2 + $0x20] sm:$0xff]   ;;  %v2089_v18 = vld [vmem:[#allocation2 + $0x18] sm:$0xff]   ;;  %v2092_v21 = vld [vmem:[#allocation2 + $0xd0] sm:$0xff]  }
  0x2b   :  { %1825 = vmatpush3.bf16.msra.mxu0 %v2077_v6  ;;  %v2086_v15 = vld [vmem:[#allocation2 + $0xa0] sm:$0xff]   ;;  %v2090_v19 = vld [vmem:[#allocation2 + $0x98] sm:$0xff]   ;;  %v2093_v25 = vld [vmem:[#allocation2 + $0x10] sm:$0xff]  }
  0x2c   :  { %1847 = vmatpush3.bf16.msra.mxu1 %v2078_v7  ;;  %1826 = vmatprep.subr.bf16.mxu0 %v2079_v8  ;;  %v2094_v26 = vld [vmem:[#allocation2 + $0x90] sm:$0xff]   ;;  %v2095_v27 = vld [vmem:[#allocation2 + $0x48] sm:$0xff]   ;;  %v2099_v33 = vld [vmem:[#allocation2 + $0x40] sm:$0xff]  }
  0x2d   :  { %1848 = vmatprep.subr.bf16.mxu1 %v2080_v9  ;;  %v2096_v28 = vld [vmem:[#allocation2 + $0xc8] sm:$0xff]   ;;  %v2100_v34 = vld [vmem:[#allocation2 + $0xc0] sm:$0xff]   ;;  %v2104_v41 = vld [vmem:[#allocation2 + $0x178] sm:$0xff]  }
  0x2e   :  { %v2097_v31 = vld [vmem:[#allocation2 + $0x8] sm:$0xff]   ;;  %v2101_v36 = vld [vmem:[#allocation2] sm:$0xff]   ;;  %v2105_v42 = vld [vmem:[#allocation2 + $0x1f8] sm:$0xff]  }
  0x2f   :  { %1827 = vmatpush3.bf16.msra.mxu0 %v2081_v10  ;;  %v2098_v32 = vld [vmem:[#allocation2 + $0x88] sm:$0xff]   ;;  %v2102_v37 = vld [vmem:[#allocation2 + $0x80] sm:$0xff]   ;;  %v2106_v47 = vld [vmem:[#allocation2 + $0x138] sm:$0xff]  }
  0x30   :  { %1849 = vmatpush3.bf16.msra.mxu1 %v2082_v11  ;;  %1828 = vmatprep.subr.bf16.mxu0 %v2083_v12  ;;  %v68_v38 = vld [vmem:[%s2402_s0] sm:$0xff]  ;;  %v2108_v50 = vld [vmem:[#allocation2 + $0x170] sm:$0xff]   ;;  %v2107_v52 = vld [vmem:[#allocation2 + $0x1b8] sm:$0xff]  }
  0x31   :  { %1850 = vmatprep.subr.bf16.mxu1 %v2084_v13  ;;  %v313_v39 = vcombine.high %v68_v38, %v68_v38  ;;  %v320_v40 = vrot.slane %v68_v38, %v2330_v35  ;;  %v2109_v54 = vld [vmem:[#allocation2 + $0x1f0] sm:$0xff]   ;;  %v2112_v57 = vld [vmem:[#allocation2 + $0x168] sm:$0xff]   ;;  %v2116_v61 = vld [vmem:[#allocation2 + $0x160] sm:$0xff]  }
  0x32   :  { %v2110_v55 = vld [vmem:[#allocation2 + $0x130] sm:$0xff]   ;;  %v2113_v59 = vld [vmem:[#allocation2 + $0x1e8] sm:$0xff]   ;;  %v2117_v63 = vld [vmem:[#allocation2 + $0x1e0] sm:$0xff]  }
  0x33   :  { %1829 = vmatpush3.bf16.msra.mxu0 %v2085_v14  ;;  %v328_v43 = vcombine.high %v320_v40, %v320_v40  ;;  %v336_v44 = vrot.slane %v320_v40, %v2330_v35  ;;  %v2338_v45 = vrot.slane %v313_v39, %v2330_v35  ;;  %v2111_v58 = vld [vmem:[#allocation2 + $0x1b0] sm:$0xff]   ;;  %v2114_v60 = vld [vmem:[#allocation2 + $0x128] sm:$0xff]   ;;  %v2118_v0 = vld [vmem:[#allocation2 + $0x120] sm:$0xff]  }
  0x34   :  { %1851 = vmatpush3.bf16.msra.mxu1 %v2086_v15  ;;  %1830 = vmatprep.subr.bf16.mxu0 %v2087_v16  ;;  %v2115_v62 = vld [vmem:[#allocation2 + $0x1a8] sm:$0xff]   ;;  %v2120_v1 = vld [vmem:[#allocation2 + $0x158] sm:$0xff]   ;;  %v2119_v2 = vld [vmem:[#allocation2 + $0x1a0] sm:$0xff]  }
  0x35   :  { %1852 = vmatprep.subr.bf16.mxu1 %v2088_v17  ;;  %v350_v46 = vrot.slane %v328_v43, %v2330_v35  ;;  %v329_v48 = vcombine.high %v2338_v45, %v2338_v45  ;;  %v358_v49 = vcombine.high %v336_v44, %v336_v44  ;;  %v2121_v3 = vld [vmem:[#allocation2 + $0x1d8] sm:$0xff]   ;;  %v2124_v5 = vld [vmem:[#allocation2 + $0x150] sm:$0xff]   ;;  %v2128_v9 = vld [vmem:[#allocation2 + $0x148] sm:$0xff]   ;;  %v343_v17 = vrot.slane %v2338_v45, %v2330_v35 }
  0x36   :  { %v2122_v4 = vld [vmem:[#allocation2 + $0x118] sm:$0xff]   ;;  %v2125_v7 = vld [vmem:[#allocation2 + $0x1d0] sm:$0xff]   ;;  %v2129_v11 = vld [vmem:[#allocation2 + $0x1c8] sm:$0xff]  }
  0x37   :  { %1831 = vmatpush3.bf16.msra.mxu0 %v2089_v18  ;;  %1177 = vmatprep.mubr.bf16.mxu0 %v350_v46  ;;  %v360_v51 = vcombine.high %v350_v46, %v350_v46  ;;  %v357_v53 = vrot.slane %v329_v48, %v2330_v35  ;;  %v2123_v6 = vld [vmem:[#allocation2 + $0x198] sm:$0xff]   ;;  %v2126_v8 = vld [vmem:[#allocation2 + $0x110] sm:$0xff]   ;;  %v2130_v12 = vld [vmem:[#allocation2 + $0x108] sm:$0xff]   ;;  %v359_v22 = vcombine.high %v343_v17, %v343_v17 }
  0x38   :  { %1853 = vmatpush3.bf16.msra.mxu1 %v2090_v19  ;;  %1832 = vmatprep.subr.bf16.mxu0 %v2091_v20  ;;  %v2127_v10 = vld [vmem:[#allocation2 + $0x190] sm:$0xff]   ;;  %v2132_v13 = vld [vmem:[#allocation2 + $0x140] sm:$0xff]   ;;  %v2131_v14 = vld [vmem:[#allocation2 + $0x188] sm:$0xff]  }
  0x39   :  { %1854 = vmatprep.subr.bf16.mxu1 %v2092_v21  ;;  %1217 = vmatprep.mubr.bf16.mxu1 %v360_v51  ;;  %v361_v56 = vcombine.high %v357_v53, %v357_v53  ;;  %v2133_v15 = vld [vmem:[#allocation2 + $0x1c0] sm:$0xff]   ;;  %v2136_v18 = vld [vmem:[#allocation2 + $0x278] sm:$0xff]   ;;  %v2140_v23 = vld [vmem:[#allocation2 + $0x270] sm:$0xff]  }
  0x3a   :  { %v2134_v16 = vld [vmem:[#allocation2 + $0x100] sm:$0xff]   ;;  %v2137_v20 = vld [vmem:[#allocation2 + $0x2f8] sm:$0xff]   ;;  %v2145_v29 = vld [vmem:[#allocation2 + $0x2e8] sm:$0xff]  }
  0x3b   :  { %1833 = vmatpush3.bf16.msra.mxu0 %v2093_v25  ;;  %v2135_v19 = vld [vmem:[#allocation2 + $0x180] sm:$0xff]   ;;  %v2138_v21 = vld [vmem:[#allocation2 + $0x238] sm:$0xff]   ;;  %v2141_v25 = vld [vmem:[#allocation2 + $0x2f0] sm:$0xff]  }
  0x3c   :  { %1855 = vmatpush3.bf16.msra.mxu1 %v2094_v26  ;;  %1834 = vmatprep.subr.bf16.mxu0 %v2095_v27  ;;  %v2139_v24 = vld [vmem:[#allocation2 + $0x2b8] sm:$0xff]   ;;  %v2142_v26 = vld [vmem:[#allocation2 + $0x230] sm:$0xff]   ;;  %v2144_v27 = vld [vmem:[#allocation2 + $0x268] sm:$0xff]  }
  0x3d   :  { %1856 = vmatprep.subr.bf16.mxu1 %v2096_v28  ;;  %v2143_v28 = vld [vmem:[#allocation2 + $0x2b0] sm:$0xff]   ;;  %v2146_v30 = vld [vmem:[#allocation2 + $0x228] sm:$0xff]   ;;  %v2153_v38 = vld [vmem:[#allocation2 + $0x2d8] sm:$0xff]  }
  0x3e   :  { %v2154_v39 = vld [vmem:[#allocation2 + $0x218] sm:$0xff]   ;;  %v2156_v40 = vld [vmem:[#allocation2 + $0x250] sm:$0xff]   ;;  %v2161_v46 = vld [vmem:[#allocation2 + $0x2c8] sm:$0xff]  }
  0x3f   :  { %1835 = vmatpush3.bf16.msra.mxu0 %v2097_v31  ;;  %v2148_v31 = vld [vmem:[#allocation2 + $0x260] sm:$0xff]   ;;  %v2158_v43 = vld [vmem:[#allocation2 + $0x210] sm:$0xff]   ;;  %v69_v51 = vld [vmem:[%s2402_s0 + $0x8] sm:$0x7f] }
  0x40   :  { %1857 = vmatpush3.bf16.msra.mxu1 %v2098_v32  ;;  %1836 = vmatprep.subr.bf16.mxu0 %v2099_v33  ;;  %v2147_v32 = vld [vmem:[#allocation2 + $0x2a8] sm:$0xff]   ;;  %v2149_v33 = vld [vmem:[#allocation2 + $0x2e0] sm:$0xff]   ;;  %v2159_v45 = vld [vmem:[#allocation2 + $0x290] sm:$0xff]  }
  0x41   :  { %1858 = vmatprep.subr.bf16.mxu1 %v2100_v34  ;;  %v2150_v34 = vld [vmem:[#allocation2 + $0x220] sm:$0xff]  }
  0x42   :  { %v2164_v48 = vld [vmem:[#allocation2 + $0x240] sm:$0xff]  }
  0x43   :  { %1837 = vmatpush3.bf16.msra.mxu0 %v2101_v36  ;;  %v2152_v36 = vld [vmem:[#allocation2 + $0x258] sm:$0xff]  }
  0x44   :  { %1859 = vmatpush3.bf16.msra.mxu1 %v2102_v37  ;;  %1866 = vmatprep.subr.bf16.mxu0 %v2104_v41  ;;  %v2151_v37 = vld [vmem:[#allocation2 + $0x2a0] sm:$0xff]   ;;  %v2155_v41 = vld [vmem:[#allocation2 + $0x298] sm:$0xff]  }
  0x45   :  { %1888 = vmatprep.subr.bf16.mxu1 %v2105_v42  ;;  %v2157_v42 = vld [vmem:[#allocation2 + $0x2d0] sm:$0xff]  }
  0x46   :  { %1178 = vmatmul.mubr.bf16.vlgmr.msra.gmra.mxu0 %v336_v44  ;;  %v2160_v44 = vld [vmem:[#allocation2 + $0x248] sm:$0xff]  }
  0x47   :  { %1867 = vmatpush3.bf16.msra.mxu0 %v2106_v47  ;;  %1218 = vmatmul.mubr.bf16.vlgmr.msra.gmra.mxu1 %v358_v49  ;;  %v2162_v47 = vld [vmem:[#allocation2 + $0x208] sm:$0xff]  }
  0x48   :  { %1868 = vmatprep.subr.bf16.mxu0 %v2108_v50  ;;  %1889 = vmatpush3.bf16.msra.mxu1 %v2107_v52  ;;  %v2163_v49 = vld [vmem:[#allocation2 + $0x288] sm:$0xff]   ;;  %v2165_v50 = vld [vmem:[#allocation2 + $0x2c0] sm:$0xff]  }
  0x49   :  { %1257 = vmatprep.mubr.bf16.mxu0 %v357_v53  ;;  %1890 = vmatprep.subr.bf16.mxu1 %v2109_v54  ;;  %v2166_v52 = vld [vmem:[#allocation2 + $0x200] sm:$0xff]   ;;  %v369_v53 = vrot.slane %v69_v51, %v2330_v35  ;;  %v362_v54 = vcombine.high %v69_v51, %v69_v51 }
  0x4a   :  { %1297 = vmatprep.mubr.bf16.mxu1 %v361_v56  ;;  %v2167_v56 = vld [vmem:[#allocation2 + $0x280] sm:$0xff]  }
  0x4b   :  { %1869 = vmatpush3.bf16.msra.mxu0 %v2110_v55  ;;  %v2168_v55 = vld [vmem:[#allocation2 + $0x378] sm:$0xff]  }
  0x4c   :  { %1870 = vmatprep.subr.bf16.mxu0 %v2112_v57  ;;  %1891 = vmatpush3.bf16.msra.mxu1 %v2111_v58  ;;  %v377_v57 = vcombine.high %v369_v53, %v369_v53  ;;  %v385_v58 = vrot.slane %v369_v53, %v2330_v35 }
  0x4d   :  { %1892 = vmatprep.subr.bf16.mxu1 %v2113_v59  ;;  %v2352_v59 = vrot.slane %v362_v54, %v2330_v35 }
  0x4f   :  { %1871 = vmatpush3.bf16.msra.mxu0 %v2114_v60  ;;  %v399_v60 = vrot.slane %v377_v57, %v2330_v35 }
  0x50   :  { %1872 = vmatprep.subr.bf16.mxu0 %v2116_v61  ;;  %1893 = vmatpush3.bf16.msra.mxu1 %v2115_v62  ;;  %v2169_v61 = vld [vmem:[#allocation2 + $0x338] sm:$0xff]   ;;  %v378_v62 = vcombine.high %v2352_v59, %v2352_v59 }
  0x51   :  { %1894 = vmatprep.subr.bf16.mxu1 %v2117_v63  ;;  %v407_v63 = vcombine.high %v385_v58, %v385_v58 }
  0x53   :  { %1873 = vmatpush3.bf16.msra.mxu0 %v2118_v0  ;;  %v2171_v0 = vld [vmem:[#allocation2 + $0x370] sm:$0xff]  }
  0x54   :  { %1874 = vmatprep.subr.bf16.mxu0 %v2120_v1  ;;  %1895 = vmatpush3.bf16.msra.mxu1 %v2119_v2  ;;  %v409_v1 = vcombine.high %v399_v60, %v399_v60  ;;  %v2170_v2 = vld [vmem:[#allocation2 + $0x3b8] sm:$0xff]  }
  0x55   :  { %1896 = vmatprep.subr.bf16.mxu1 %v2121_v3  ;;  %v406_v3 = vrot.slane %v378_v62, %v2330_v35 }
  0x57   :  { %1875 = vmatpush3.bf16.msra.mxu0 %v2122_v4  ;;  %v2279_v4 = vmov 0.0  }
  0x58   :  { %1876 = vmatprep.subr.bf16.mxu0 %v2124_v5  ;;  %1897 = vmatpush3.bf16.msra.mxu1 %v2123_v6  ;;  %v2172_v5 = vld [vmem:[#allocation2 + $0x330] sm:$0xff]   ;;  %v2174_v6 = vld [vmem:[#allocation2 + $0x368] sm:$0xff]  }
  0x59   :  { %1898 = vmatprep.subr.bf16.mxu1 %v2125_v7  ;;  %v2173_v7 = vld [vmem:[#allocation2 + $0x3b0] sm:$0xff]  }
  0x5b   :  { %1877 = vmatpush3.bf16.msra.mxu0 %v2126_v8  ;;  %v2175_v8 = vld [vmem:[#allocation2 + $0x328] sm:$0xff]  }
  0x5c   :  { %1878 = vmatprep.subr.bf16.mxu0 %v2128_v9  ;;  %1899 = vmatpush3.bf16.msra.mxu1 %v2127_v10  ;;  %v2177_v9 = vld [vmem:[#allocation2 + $0x360] sm:$0xff]   ;;  %v2176_v10 = vld [vmem:[#allocation2 + $0x3a8] sm:$0xff]  }
  0x5d   :  { %1900 = vmatprep.subr.bf16.mxu1 %v2129_v11  ;;  %v2178_v11 = vld [vmem:[#allocation2 + $0x320] sm:$0xff]  }
  0x5f   :  { %1879 = vmatpush3.bf16.msra.mxu0 %v2130_v12  ;;  %v2180_v12 = vld [vmem:[#allocation2 + $0x358] sm:$0xff]  }
  0x60   :  { %1880 = vmatprep.subr.bf16.mxu0 %v2132_v13  ;;  %1901 = vmatpush3.bf16.msra.mxu1 %v2131_v14  ;;  %v2179_v13 = vld [vmem:[#allocation2 + $0x3a0] sm:$0xff]   ;;  %v2181_v14 = vld [vmem:[#allocation2 + $0x318] sm:$0xff]  }
  0x61   :  { %1902 = vmatprep.subr.bf16.mxu1 %v2133_v15  ;;  %v2183_v15 = vld [vmem:[#allocation2 + $0x350] sm:$0xff]  }
  0x63   :  { %1881 = vmatpush3.bf16.msra.mxu0 %v2134_v16  ;;  %v2182_v16 = vld [vmem:[#allocation2 + $0x398] sm:$0xff]  }
  0x64   :  { %1910 = vmatprep.subr.bf16.mxu0 %v2136_v18  ;;  %1903 = vmatpush3.bf16.msra.mxu1 %v2135_v19  ;;  %v2186_v18 = vld [vmem:[#allocation2 + $0x348] sm:$0xff]   ;;  %v2185_v19 = vld [vmem:[#allocation2 + $0x390] sm:$0xff]  }
  0x65   :  { %1932 = vmatprep.subr.bf16.mxu1 %v2137_v20  ;;  %v2187_v20 = vld [vmem:[#allocation2 + $0x308] sm:$0xff]  }
  0x66   :  { %1258 = vmatmul.mubr.bf16.vlgmr.msra.gmra.mxu0 %v343_v17  ;;  %v2184_v17 = vld [vmem:[#allocation2 + $0x310] sm:$0xff]  }
  0x67   :  { %1911 = vmatpush3.bf16.msra.mxu0 %v2138_v21  ;;  %1298 = vmatmul.mubr.bf16.vlgmr.msra.gmra.mxu1 %v359_v22  ;;  %v2189_v21 = vld [vmem:[#allocation2 + $0x340] sm:$0xff]   ;;  %v2188_v22 = vld [vmem:[#allocation2 + $0x388] sm:$0xff]  }
  0x68   :  { %1912 = vmatprep.subr.bf16.mxu0 %v2140_v23  ;;  %1933 = vmatpush3.bf16.msra.mxu1 %v2139_v24  ;;  %v2190_v23 = vld [vmem:[#allocation2 + $0x300] sm:$0xff]   ;;  %v392_v24 = vrot.slane %v2352_v59, %v2330_v35  ;;  %v2193_v35 = vld [vmem:[#allocation4 + $0x38] sm:$0xff]  }
  0x69   :  { %1934 = vmatprep.subr.bf16.mxu1 %v2141_v25  ;;  %1337 = vmatprep.mubr.bf16.mxu0 %v399_v60  ;;  %v2191_v25 = vld [vmem:[#allocation2 + $0x380] sm:$0xff]  }
  0x6a   :  { %1377 = vmatprep.mubr.bf16.mxu1 %v409_v1 }
  0x6b   :  { %1913 = vmatpush3.bf16.msra.mxu0 %v2142_v26  ;;  %v408_v26 = vcombine.high %v392_v24, %v392_v24 }
  0x6c   :  { %1914 = vmatprep.subr.bf16.mxu0 %v2144_v27  ;;  %1935 = vmatpush3.bf16.msra.mxu1 %v2143_v28  ;;  %v2194_v27 = vld [vmem:[#allocation4 + $0x30] sm:$0xff]   ;;  %v2195_v28 = vld [vmem:[#allocation4 + $0x28] sm:$0xff]  }
  0x6d   :  { %1936 = vmatprep.subr.bf16.mxu1 %v2145_v29  ;;  %v2196_v29 = vld [vmem:[#allocation4 + $0x20] sm:$0xff]  }
  0x6f   :  { %1915 = vmatpush3.bf16.msra.mxu0 %v2146_v30  ;;  %v2197_v30 = vld [vmem:[#allocation4 + $0x18] sm:$0xff]  }
  0x70   :  { %1916 = vmatprep.subr.bf16.mxu0 %v2148_v31  ;;  %1937 = vmatpush3.bf16.msra.mxu1 %v2147_v32  ;;  %v2198_v31 = vld [vmem:[#allocation4 + $0x10] sm:$0xff]   ;;  %v2199_v32 = vld [vmem:[#allocation4 + $0x8] sm:$0xff]  }
  0x71   :  { %1938 = vmatprep.subr.bf16.mxu1 %v2149_v33  ;;  %v2200_v33 = vld [vmem:[#allocation4] sm:$0xff]  }
  0x73   :  { %1917 = vmatpush3.bf16.msra.mxu0 %v2150_v34  ;;  %v2201_v34 = vld [vmem:[#allocation6 + $0x38] sm:$0xff]  }
  0x74   :  { %1918 = vmatprep.subr.bf16.mxu0 %v2152_v36  ;;  %1939 = vmatpush3.bf16.msra.mxu1 %v2151_v37  ;;  %v2202_v36 = vld [vmem:[#allocation6 + $0x30] sm:$0xff]   ;;  %v2203_v37 = vld [vmem:[#allocation6 + $0x28] sm:$0xff]  }
  0x75   :  { %1940 = vmatprep.subr.bf16.mxu1 %v2153_v38  ;;  %v2204_v38 = vld [vmem:[#allocation6 + $0x20] sm:$0xff]  }
  0x77   :  { %1919 = vmatpush3.bf16.msra.mxu0 %v2154_v39  ;;  %v2205_v39 = vld [vmem:[#allocation6 + $0x18] sm:$0xff]  }
  0x78   :  { %1920 = vmatprep.subr.bf16.mxu0 %v2156_v40  ;;  %1941 = vmatpush3.bf16.msra.mxu1 %v2155_v41  ;;  %v2206_v40 = vld [vmem:[#allocation6 + $0x10] sm:$0xff]  }
  0x79   :  { %1942 = vmatprep.subr.bf16.mxu1 %v2157_v42 }
  0x7b   :  { %1921 = vmatpush3.bf16.msra.mxu0 %v2158_v43  ;;  %v310_v43 = vld [vmem:[%s2404_s2] sm:$0x1] }
  0x7c   :  { %1922 = vmatprep.subr.bf16.mxu0 %v2160_v44  ;;  %1943 = vmatpush3.bf16.msra.mxu1 %v2159_v45 }
  0x7d   :  { %1944 = vmatprep.subr.bf16.mxu1 %v2161_v46 }
  0x7f   :  { %1923 = vmatpush3.bf16.msra.mxu0 %v2162_v47 }
  0x80   :  { %1924 = vmatprep.subr.bf16.mxu0 %v2164_v48  ;;  %1945 = vmatpush3.bf16.msra.mxu1 %v2163_v49 }
  0x81   :  { %1946 = vmatprep.subr.bf16.mxu1 %v2165_v50 }
  0x83   :  { %1925 = vmatpush3.bf16.msra.mxu0 %v2166_v52 }
  0x84   :  { %1954 = vmatprep.subr.bf16.mxu0 %v2168_v55  ;;  %1947 = vmatpush3.bf16.msra.mxu1 %v2167_v56 }
  0x85   :  { %2003 = vmatprep.subr.bf16.mxu1 %v2279_v4 }
  0x86   :  { %1338 = vmatmul.mubr.bf16.vlgmr.msra.gmra.mxu0 %v385_v58 }
  0x87   :  { %1955 = vmatpush3.bf16.msra.mxu0 %v2169_v61  ;;  %1378 = vmatmul.mubr.bf16.vlgmr.msra.gmra.mxu1 %v407_v63 }
  0x88   :  { %1956 = vmatprep.subr.bf16.mxu0 %v2171_v0  ;;  %2004 = vmatpush3.bf16.msra.mxu1 %v2170_v2 }
  0x89   :  { %1417 = vmatprep.mubr.bf16.mxu0 %v406_v3  ;;  %2005 = vmatprep.subr.bf16.mxu1 %v2279_v4 }
  0x8a   :  { %2019 = vmatprep.mubr.msk.bf16.mxu1 %vm2280_vm0, %v2279_v4 }
  0x8b   :  { %1957 = vmatpush3.bf16.msra.mxu0 %v2172_v5 }
  0x8c   :  { %1958 = vmatprep.subr.bf16.mxu0 %v2174_v6  ;;  %2006 = vmatpush3.bf16.msra.mxu1 %v2173_v7 }
  0x8d   :  { %2007 = vmatprep.subr.bf16.mxu1 %v2279_v4 }
  0x8f   :  { %1959 = vmatpush3.bf16.msra.mxu0 %v2175_v8 }
  0x90   :  { %1960 = vmatprep.subr.bf16.mxu0 %v2177_v9  ;;  %2008 = vmatpush3.bf16.msra.mxu1 %v2176_v10 }
  0x91   :  { %2009 = vmatprep.subr.bf16.mxu1 %v2279_v4 }
  0x93   :  { %1961 = vmatpush3.bf16.msra.mxu0 %v2178_v11 }
  0x94   :  { %1962 = vmatprep.subr.bf16.mxu0 %v2180_v12  ;;  %2010 = vmatpush3.bf16.msra.mxu1 %v2179_v13 }
  0x95   :  { %2011 = vmatprep.subr.bf16.mxu1 %v2279_v4 }
  0x97   :  { %1963 = vmatpush3.bf16.msra.mxu0 %v2181_v14 }
  0x98   :  { %1964 = vmatprep.subr.bf16.mxu0 %v2183_v15  ;;  %2012 = vmatpush3.bf16.msra.mxu1 %v2182_v16 }
  0x99   :  { %2013 = vmatprep.subr.bf16.mxu1 %v2279_v4 }
  0x9b   :  { %1965 = vmatpush3.bf16.msra.mxu0 %v2184_v17 }
  0x9c   :  { %1966 = vmatprep.subr.bf16.mxu0 %v2186_v18  ;;  %2014 = vmatpush3.bf16.msra.mxu1 %v2185_v19 }
  0x9d   :  { %2015 = vmatprep.subr.bf16.mxu1 %v2279_v4 }
  0x9f   :  { %1967 = vmatpush3.bf16.msra.mxu0 %v2187_v20 }
  0xa0   :  { %1968 = vmatprep.subr.bf16.mxu0 %v2189_v21  ;;  %2016 = vmatpush3.bf16.msra.mxu1 %v2188_v22 }
  0xa1   :  { %2017 = vmatprep.subr.bf16.mxu1 %v2279_v4 }
  0xa3   :  { %1969 = vmatpush3.bf16.msra.mxu0 %v2190_v23 }
  0xa4   :  { %2023 = vmatprep.subr.bf16.mxu0 %v2279_v4  ;;  %2018 = vmatpush3.bf16.msra.mxu1 %v2191_v25 }
  0xa5   :  { %2043 = vmatprep.subr.bf16.mxu1 %v2279_v4 }
  0xa6   :  { %1418 = vmatmul.mubr.bf16.vlgmr.msra.gmra.mxu0 %v392_v24 }
  0xa7   :  { %2039 = vmatprep.mubr.msk.bf16.mxu0 %vm2280_vm0, %v2279_v4  ;;  %2020 = vmatmul.mubr.bf16.vlgmr.msra.gmra.mxu1 %v408_v26 }
  0xa8   :  { %2059 = vmatprep.mubr.msk.bf16.mxu1 %vm2280_vm0, %v2279_v4  ;;  %2024 = vmatpush3.bf16.msra.mxu0 %v2193_v35 }
  0xa9   :  { %2025 = vmatprep.subr.bf16.mxu0 %v2279_v4  ;;  %2044 = vmatpush3.bf16.msra.mxu1 %v2201_v34 }
  0xaa   :  { %2045 = vmatprep.subr.bf16.mxu1 %v2279_v4 }
  0xac   :  { %2026 = vmatpush3.bf16.msra.mxu0 %v2194_v27  ;;  %v2207_v27 = vld [vmem:[#allocation6 + $0x8] sm:$0xff]  }
  0xad   :  { %2027 = vmatprep.subr.bf16.mxu0 %v2279_v4  ;;  %2046 = vmatpush3.bf16.msra.mxu1 %v2202_v36 }
  0xae   :  { %2047 = vmatprep.subr.bf16.mxu1 %v2279_v4 }
  0xb0   :  { %2028 = vmatpush3.bf16.msra.mxu0 %v2195_v28  ;;  %v2208_v28 = vld [vmem:[#allocation6] sm:$0xff]  }
  0xb1   :  { %2029 = vmatprep.subr.bf16.mxu0 %v2279_v4  ;;  %2048 = vmatpush3.bf16.msra.mxu1 %v2203_v37 }
  0xb2   :  { %2049 = vmatprep.subr.bf16.mxu1 %v2279_v4 }
  0xb4   :  { %2030 = vmatpush3.bf16.msra.mxu0 %v2196_v29  ;;  %v1483_v29 = vld [vmem:[%s2406_s4] sm:$0x1] }
  0xb5   :  { %2031 = vmatprep.subr.bf16.mxu0 %v2279_v4  ;;  %2050 = vmatpush3.bf16.msra.mxu1 %v2204_v38  ;;  %v1590_v38 = vld [vmem:[%s2408_s6] sm:$0x1] }
  0xb6   :  { %2051 = vmatprep.subr.bf16.mxu1 %v2279_v4 }
  0xb8   :  { %2032 = vmatpush3.bf16.msra.mxu0 %v2197_v30 }
  0xb9   :  { %2033 = vmatprep.subr.bf16.mxu0 %v2279_v4  ;;  %2052 = vmatpush3.bf16.msra.mxu1 %v2205_v39 }
  0xba   :  { %2053 = vmatprep.subr.bf16.mxu1 %v2279_v4 }
  0xbc   :  { %2034 = vmatpush3.bf16.msra.mxu0 %v2198_v31 }
  0xbd   :  { %2035 = vmatprep.subr.bf16.mxu0 %v2279_v4  ;;  %2054 = vmatpush3.bf16.msra.mxu1 %v2206_v40 }
  0xbe   :  { %2055 = vmatprep.subr.bf16.mxu1 %v2279_v4 }
  0xc0   :  { %2036 = vmatpush3.bf16.msra.mxu0 %v2199_v32 }
  0xc1   :  { %2037 = vmatprep.subr.bf16.mxu0 %v2279_v4  ;;  %2056 = vmatpush3.bf16.msra.mxu1 %v2207_v27 }
  0xc2   :  { %2057 = vmatprep.subr.bf16.mxu1 %v2279_v4 }
  0xc4   :  { %2038 = vmatpush3.bf16.msra.mxu0 %v2200_v33 }
  0xc5   :  { %2058 = vmatpush3.bf16.msra.mxu1 %v2208_v28 }
 0x106   :  { %v1838_v41 = vpop.f32.mrf.mxu0 }
 0x107   :  { %v1860_v42 = vpop.f32.mrf.mxu1 }
 0x108   :  { %v1839_v44 = vpop.f32.mrf.mxu0 }
 0x109   :  { %v1840_v45 = vadd.f32 %v1839_v44, %v1838_v41  ;;  %v1861_v46 = vpop.f32.mrf.mxu1 }
 0x10a   :  { %v1841_v47 = vpop.f32.mrf.mxu0  ;;  %v1862_v49 = vadd.f32 %v1861_v46, %v1860_v42 }
 0x10b   :  { %v1180_v48 = vadd.f32 %v1840_v45, %v310_v43  ;;  %v1863_v50 = vpop.f32.mrf.mxu1 }
 0x10c   :  { %v1842_v51 = vpop.f32.mrf.mxu0 }
 0x10d   :  { %v1220_v52 = vadd.f32 %v1862_v49, %v1180_v48  ;;  %v1864_v53 = vpop.f32.mrf.mxu1 }
 0x126   :  { %v1882_v54 = vpop.f32.mrf.mxu0 }
 0x127   :  { %v1904_v55 = vpop.f32.mrf.mxu1 }
 0x128   :  { %v1883_v56 = vpop.f32.mrf.mxu0 }
 0x129   :  { %v1905_v57 = vpop.f32.mrf.mxu1  ;;  %v1884_v7 = vadd.f32 %v1883_v56, %v1882_v54 }
 0x12a   :  { %v1885_v58 = vpop.f32.mrf.mxu0  ;;  %v1906_v9 = vadd.f32 %v1905_v57, %v1904_v55 }
 0x12b   :  { %v1907_v59 = vpop.f32.mrf.mxu1  ;;  %v1260_v8 = vadd.f32 %v1884_v7, %v1220_v52 }
 0x12c   :  { %v1886_v60 = vpop.f32.mrf.mxu0 }
 0x12d   :  { %v1908_v61 = vpop.f32.mrf.mxu1  ;;  %v1300_v11 = vadd.f32 %v1906_v9, %v1260_v8 }
 0x146   :  { %v1926_v62 = vpop.f32.mrf.mxu0 }
 0x147   :  { %v1948_v63 = vpop.f32.mrf.mxu1 }
 0x148   :  { %v1927_v0 = vpop.f32.mrf.mxu0 }
 0x149   :  { %v1949_v1 = vpop.f32.mrf.mxu1  ;;  %v1928_v10 = vadd.f32 %v1927_v0, %v1926_v62 }
 0x14a   :  { %v1929_v2 = vpop.f32.mrf.mxu0  ;;  %v1950_v13 = vadd.f32 %v1949_v1, %v1948_v63 }
 0x14b   :  { %v1951_v3 = vpop.f32.mrf.mxu1  ;;  %v1340_v12 = vadd.f32 %v1928_v10, %v1300_v11 }
 0x14c   :  { %v1930_v5 = vpop.f32.mrf.mxu0 }
 0x14d   :  { %v1952_v6 = vpop.f32.mrf.mxu1  ;;  %v1380_v17 = vadd.f32 %v1950_v13, %v1340_v12 }
 0x166   :  { %v1970_v14 = vpop.f32.mrf.mxu0 }
 0x167   :  { %v1459_v15 = vpop.f32.mrf.mxu1 }
 0x168   :  { %v1971_v16 = vpop.f32.mrf.mxu0 }
 0x169   :  { %v1972_v18 = vadd.f32 %v1971_v16, %v1970_v14  ;;  %v2021_v19 = vpop.f32.mrf.mxu1 }
 0x16a   :  { %v1973_v20 = vpop.f32.mrf.mxu0 }
 0x16b   :  { %v1420_v21 = vadd.f32 %v1972_v18, %v1380_v17  ;;  %v1462_v22 = vpop.f32.mrf.mxu1 }
 0x16c   :  { %v1974_v23 = vpop.f32.mrf.mxu0 }
 0x16d   :  { %v1460_v24 = vadd.f32 %v1459_v15, %v1420_v21  ;;  %v2022_v25 = vpop.f32.mrf.mxu1 }
 0x16f   :  { %v1465_v26 = vmax.f32 %v1460_v24, 0.0 }
 0x171   :  { %v1466_v35 = vpack.c.bf16 %v1465_v26, %v1465_v26 }
 0x173   :  { %2040 = vmatmul.mubr.bf16.vlgmr.msra.gmra.mxu0 %v1466_v35 }
 0x233   :  { %v1566_v30 = vpop.f32.mrf.mxu0 }
 0x234   :  { %v1567_v31 = vadd.f32 %v1566_v30, %v1483_v29 }
 0x235   :  { %v2041_v32 = vpop.f32.mrf.mxu0 }
 0x236   :  { %v1572_v33 = vmax.f32 %v1567_v31, 0.0 }
 0x237   :  { %v1569_v34 = vpop.f32.mrf.mxu0 }
 0x238   :  { %v1573_v36 = vpack.c.bf16 %v1572_v33, %v1572_v33 }
 0x239   :  { %v2042_v37 = vpop.f32.mrf.mxu0 }
 0x23a   :  { %2060 = vmatmul.mubr.bf16.vlgmr.msra.gmra.mxu1 %v1573_v36 }
 0x2fa   :  { %v1673_v39 = vpop.f32.mrf.mxu1 }
 0x2fb   :  { %v1674_v4 = vadd.f32 %v1673_v39, %v1590_v38 }
 0x2fc   :  { %v2061_v40 = vpop.f32.mrf.mxu1 }
 0x2fd   :  { %1679 = vst [vmem:[%s2409_s7] sm:$0x1] %v1674_v4 }
 0x2fe   :  { %v1676_v41 = vpop.f32.mrf.mxu1 }
 0x300   :  { %v2062_v42 = vpop.f32.mrf.mxu1 }
 0x301   :  { %1684 = vsyncpa [#allocation3], 1 }
 0x302   :  { %1685 = vsyncpa [#allocation5], 1 }

</bundles_post_ra>
